<compile_context>
chip_gen: v7x
topology: tpu7x:2x2x1
jax: 0.10.0
libtpu: 0.0.40
codegen_flags: <defaults>
</compile_context>

<pallas_src>
import math

import jax
import jax.numpy as jnp
from jax.experimental import pallas as pl
from jax.experimental.pallas import tpu as pltpu

# ---------------------------------------------------------------------------
# module hyper-parameters (defaults of GridManifoldNetwork.__init__)
# ---------------------------------------------------------------------------
BOUNDING_BOX_RADIUS = 1.0
NUM_LAYERS = 2
DIM_HIDDEN = 64
N_LEVELS = 6
N_FEATURES_PER_LEVEL = 2
LOG2_HASHMAP_SIZE = 19
BASE_RESOLUTION = 16
PER_LEVEL_SCALE = 2.0
# NOTE: geometry_init(i, num_layers, init_radius) puts init_radius into
# `skip_input_layers`; `radius` keeps its default 0.0, so last-layer bias = -0.0.
DIM_ENCODING = N_LEVELS * N_FEATURES_PER_LEVEL      # 12
DIM_XYZ = 3
DIM_IN = DIM_XYZ + DIM_ENCODING                     # 15
DIM_IN_PAD = 16                                     # 15 -> 16 (MXU-friendly)

_HASH_PRIMES = (1, 2654435761, 805459861)

_LANE_QUANTUM = 512          # N-padding quantum (multiple of 128)
_DEFAULT_BLOCK = 8192        # points per grid step (generation-safe VMEM)


def _round_up(n: int, m: int) -> int:
    return (n + m - 1) // m * m


def _cdiv(a: int, b: int) -> int:
    return -(-a // b)


# ---------------------------------------------------------------------------
# Hash-grid encoding (plain JAX glue; tcnn HashGrid semantics).
# Produces features already transposed: (DIM_ENCODING, N), lane-dense for the
# Pallas kernel (no extra transpose / concat materialization in HBM).
# ---------------------------------------------------------------------------
def _level_resolution(level: int) -> int:
    scale = BASE_RESOLUTION * (PER_LEVEL_SCALE ** level) - 1.0
    return int(math.ceil(scale)) + 1


def _level_table_size(level: int) -> int:
    res = _level_resolution(level)
    return min((res + 1) ** 3, 2 ** LOG2_HASHMAP_SIZE)


def hashgrid_encode_t(x01, tables):
    """x01: (N, 3) in [0, 1]  ->  (DIM_ENCODING, N) float32 (transposed)."""
    n = x01.shape[0]
    feats = []
    for lvl, table in enumerate(tables):
        scale = BASE_RESOLUTION * (PER_LEVEL_SCALE ** lvl) - 1.0
        res = _level_resolution(lvl)
        table_size = table.shape[0]
        hashed = (res + 1) ** 3 > table_size

        pos = x01 * scale + 0.5
        pos_grid_f = jnp.floor(pos)
        frac = pos - pos_grid_f
        pos_grid = pos_grid_f.astype(jnp.uint32)

        acc = jnp.zeros((N_FEATURES_PER_LEVEL, n), jnp.float32)
        for c in range(8):  # 8 voxel corners, trilinear interpolation
            offs = jnp.array([(c >> d) & 1 for d in range(3)], dtype=jnp.uint32)
            corner = pos_grid + offs[None, :]
            if hashed:
                idx = (corner[:, 0] * jnp.uint32(_HASH_PRIMES[0])
                       ^ corner[:, 1] * jnp.uint32(_HASH_PRIMES[1])
                       ^ corner[:, 2] * jnp.uint32(_HASH_PRIMES[2]))
                idx = idx % jnp.uint32(table_size)
            else:
                stride = jnp.uint32(res + 1)
                idx = (corner[:, 0]
                       + corner[:, 1] * stride
                       + corner[:, 2] * stride * stride)
            w = jnp.prod(
                jnp.where(offs[None, :] == 1, frac, 1.0 - frac), axis=-1)
            gathered = table[idx.astype(jnp.int32)]          # (N, 2)
            acc = acc + w[None, :] * gathered.T              # (2, N)
        feats.append(acc)
    return jnp.concatenate(feats, axis=0)                    # (12, N)


# ---------------------------------------------------------------------------
# Pallas MLP kernel (transposed / lane-dense, fused first layer, bf16 feed):
#   relu(W0 @ [x;f;0] + b0) -> W1 @ h + b1
# ---------------------------------------------------------------------------
def _mlp_kernel(in_ref, w0_ref, b0_ref, w1_ref, b1_ref, o_ref):
    # in_ref: (16, tm) bf16   w0: (64, 16) bf16   b0: (64, 1) f32
    # w1:     (1, 64) bf16    b1 (SMEM): (1,) f32   o: (1, tm) f32
    h = jnp.dot(w0_ref[...], in_ref[...],
                preferred_element_type=jnp.float32) + b0_ref[...]
    h = jnp.maximum(h, 0.0).astype(jnp.bfloat16)          # Linear0 + ReLU (f32)
    o_ref[...] = (jnp.dot(w1_ref[...], h,
                          preferred_element_type=jnp.float32)
                  + b1_ref[0])                             # last Linear


def mlp_pallas(packed_t, w0, b0, w1, b1, *, block):
    """packed_t: (16, N) bf16, N % block == 0, block % 128 == 0 -> (1, N) f32."""
    n = packed_t.shape[1]
    assert n % block == 0 and block % 128 == 0
    grid = (n // block,)

    flops = 2 * n * (DIM_HIDDEN * DIM_IN_PAD + DIM_HIDDEN)
    bytes_accessed = (n * (DIM_IN_PAD * 2 + 1 * 4)         # bf16 in, f32 out
                      + int(w0.size) * 2 + int(b0.size) * 4
                      + int(w1.size) * 2 + int(b1.size) * 4)

    return pl.pallas_call(
        _mlp_kernel,
        out_shape=jax.ShapeDtypeStruct((1, n), jnp.float32),
        grid=grid,
        in_specs=[
            pl.BlockSpec((DIM_IN_PAD, block), lambda i: (0, i)),      # packed tile
            pl.BlockSpec((DIM_HIDDEN, DIM_IN_PAD), lambda i: (0, 0)), # fused W0
            pl.BlockSpec((DIM_HIDDEN, 1), lambda i: (0, 0)),          # b0 column
            pl.BlockSpec((1, DIM_HIDDEN), lambda i: (0, 0)),          # W1
            pl.BlockSpec(memory_space=pltpu.MemorySpace.SMEM),        # b1 scalar
        ],
        out_specs=pl.BlockSpec((1, block), lambda i: (0, i)),         # lane-dense
        compiler_params=pltpu.CompilerParams(
            dimension_semantics=("parallel",)),
        cost_estimate=pl.CostEstimate(
            flops=flops, transcendentals=0, bytes_accessed=bytes_accessed),
    )(packed_t, w0, b0, w1, b1)


# ---------------------------------------------------------------------------
# Tile / padding policy.
# ---------------------------------------------------------------------------
def _choose_block(n: int, target: int):
    """Pick (block, n_pad): block % 128 == 0, block divides n_pad, overshoot
    bounded to ~one 512-point quantum per step (not a whole block), and
    >= 2 grid steps when N is large enough so the 'parallel' axis shards
    across v7x's two TensorCores."""
    target = max(target, _LANE_QUANTUM)
    n128 = _round_up(n, 128)
    if n128 <= _LANE_QUANTUM:                # tiny N: single small block
        return n128, n128
    nq = _round_up(n, _LANE_QUANTUM)
    steps = max(2, _cdiv(nq, target))
    block = _round_up(_cdiv(nq, steps), _LANE_QUANTUM)
    steps = _cdiv(nq, block)
    return block, block * steps


# ---------------------------------------------------------------------------
# Deterministic parameter init (matches __init__ semantics: geometry init).
# ---------------------------------------------------------------------------
def init_params(key):
    keys = jax.random.split(key, N_LEVELS + 1)
    # HashGrid feature tables, tcnn default init: U(-1e-4, 1e-4)
    tables = []
    for lvl in range(N_LEVELS):
        size = _level_table_size(lvl)
        tables.append(jax.random.uniform(
            keys[lvl], (size, N_FEATURES_PER_LEVEL), jnp.float32,
            minval=-1e-4, maxval=1e-4))

    # layer 0 (first-layer geometry init): W[:, :3] ~ N(0, sqrt(2/out)), rest 0
    w0_xyz = (jax.random.normal(keys[-1], (DIM_HIDDEN, DIM_XYZ), jnp.float32)
              * math.sqrt(2.0 / DIM_HIDDEN))
    w0_feat = jnp.zeros((DIM_HIDDEN, DIM_ENCODING), jnp.float32)
    b0 = jnp.zeros((DIM_HIDDEN, 1), jnp.float32)

    # layer 1 (last-layer geometry init): W = sqrt(pi/in), bias = -radius = 0
    w1 = jnp.full((1, DIM_HIDDEN), math.sqrt(math.pi / DIM_HIDDEN), jnp.float32)
    b1 = jnp.zeros((1,), jnp.float32)
    return tables, (w0_xyz, w0_feat, b0, w1, b1)


# ---------------------------------------------------------------------------
# Full forward pass: M : x -> s
# ---------------------------------------------------------------------------
def grid_manifold_forward(x, tables, mlp_params, *, tm=_DEFAULT_BLOCK):
    w0x, w0f, b0, w1, b1 = mlp_params
    n = x.shape[0]

    # ---- encoding (plain JAX glue) -> packed, lane-dense, bf16 kernel input
    x_normed = (x + BOUNDING_BOX_RADIUS) / (2.0 * BOUNDING_BOX_RADIUS)
    f_t = hashgrid_encode_t(x_normed, tables)                       # (12, N)
    packed = jnp.concatenate(
        [x.T, f_t, jnp.zeros((DIM_IN_PAD - DIM_IN, n), jnp.float32)], axis=0)
    packed = packed.astype(jnp.bfloat16)                            # (16, N)

    # ---- ragged N: pad only to the chosen block quantum
    block, n_pad = _choose_block(n, tm)
    if n_pad != n:
        packed = jnp.pad(packed, ((0, 0), (0, n_pad - n)))

    # ---- fused / bf16 kernel-layout weights (PyTorch (out, in), no transpose)
    w0 = jnp.concatenate(
        [w0x, w0f, jnp.zeros((DIM_HIDDEN, DIM_IN_PAD - DIM_IN), jnp.float32)],
        axis=1).astype(jnp.bfloat16)                                # (64, 16)
    w1_b = w1.astype(jnp.bfloat16)                                  # (1, 64)

    out_t = mlp_pallas(packed, w0, b0, w1_b, b1, block=block)       # (1, n_pad)
    return out_t[0, :n].reshape(n, 1)                               # (N, 1)


# ---------------------------------------------------------------------------
# Self-test
# ---------------------------------------------------------------------------
if __name__ == "__main__":
    key = jax.random.PRNGKey(0)
    k_param, k_x = jax.random.split(key)
    tables, mlp_params = init_params(k_param)

    def reference(x, tables, mlp_params):
        # Pure-JAX reference mirroring the kernel's bf16-feed / f32-accumulate.
        w0x, w0f, b0, w1, b1 = mlp_params
        x_normed = (x + BOUNDING_BOX_RADIUS) / (2.0 * BOUNDING_BOX_RADIUS)
        f_t = hashgrid_encode_t(x_normed, tables)                   # (12, N)
        packed = jnp.concatenate([x.T, f_t], axis=0).astype(jnp.bfloat16)
        w0 = jnp.concatenate([w0x, w0f], axis=1).astype(jnp.bfloat16)
        h = jnp.maximum(
            jnp.dot(w0, packed, preferred_element_type=jnp.float32) + b0,
            0.0).astype(jnp.bfloat16)
        out = (jnp.dot(w1.astype(jnp.bfloat16), h,
                       preferred_element_type=jnp.float32) + b1[0])
        return out.T                                                 # (N, 1)

    fwd = jax.jit(grid_manifold_forward, static_argnames=("tm",))

    # Small N (not a multiple of 128): exercises quantum padding, single step.
    n1 = 200
    x1 = jax.random.uniform(k_x, (n1, 3), jnp.float32,
                            minval=-BOUNDING_BOX_RADIUS,
                            maxval=BOUNDING_BOX_RADIUS)
    out1 = jax.block_until_ready(fwd(x1, tables, mlp_params))
    ref1 = reference(x1, tables, mlp_params)
    assert out1.shape == (n1, 1) and out1.dtype == jnp.float32
    assert bool(jnp.all(jnp.isfinite(out1)))
    assert bool(jnp.allclose(out1, ref1, atol=1e-2, rtol=1e-2))

    # Larger N with a small tile: exercises the multi-step (megacore) path.
    n2 = 1000
    x2 = jax.random.uniform(jax.random.PRNGKey(1), (n2, 3), jnp.float32,
                            minval=-BOUNDING_BOX_RADIUS,
                            maxval=BOUNDING_BOX_RADIUS)
    out2 = jax.block_until_ready(fwd(x2, tables, mlp_params, tm=512))
    ref2 = reference(x2, tables, mlp_params)
    assert out2.shape == (n2, 1) and out2.dtype == jnp.float32
    assert bool(jnp.all(jnp.isfinite(out2)))
    assert bool(jnp.allclose(out2, ref2, atol=1e-2, rtol=1e-2))

    print("KERNEL_OK")
</pallas_src>

<mosaic_0001>
module attributes {stable_mosaic.version = 11 : i64} {
  func.func @_mlp_kernel(%arg0: i32, %arg1: memref<16x256xbf16, #tpu.memory_space<vmem>>, %arg2: memref<64x16xbf16, #tpu.memory_space<vmem>>, %arg3: memref<64x1xf32, #tpu.memory_space<vmem>>, %arg4: memref<1x64xbf16, #tpu.memory_space<vmem>>, %arg5: memref<1xf32, #tpu.memory_space<smem>>, %arg6: memref<1x256xf32, #tpu.memory_space<vmem>>) attributes {dimension_semantics = [#tpu.dimension_semantics<parallel>], iteration_bounds = array<i64: 1>, scalar_prefetch = 0 : i64, scratch_operands = 0 : i64, tpu.core_type = #tpu.core_type<tc>, window_params = [{transform_indices = @transform_0, window_bounds = array<i64: 16, 256>}, {pipeline_mode = #tpu.pipeline_mode<synchronous>, transform_indices = @transform_1, window_bounds = array<i64: 64, 16>}, {pipeline_mode = #tpu.pipeline_mode<synchronous>, transform_indices = @transform_2, window_bounds = array<i64: 64, 1>}, {pipeline_mode = #tpu.pipeline_mode<synchronous>, transform_indices = @transform_3, window_bounds = array<i64: 1, 64>}, {transform_indices = @transform_4, window_bounds = array<i64: 1>}, {transform_indices = @transform_5, window_bounds = array<i64: 1, 256>}]} {
    %c0 = arith.constant 0 : index
    %c0_0 = arith.constant 0 : index
    %0 = vector.load %arg2[%c0, %c0_0] : memref<64x16xbf16, #tpu.memory_space<vmem>>, vector<64x16xbf16>
    %c0_1 = arith.constant 0 : index
    %c0_2 = arith.constant 0 : index
    %1 = vector.load %arg1[%c0_1, %c0_2] : memref<16x256xbf16, #tpu.memory_space<vmem>>, vector<16x256xbf16>
    %cst = arith.constant dense<0.000000e+00> : vector<64x256xf32>
    %2 = tpu.matmul %0, %1, %cst {dimension_numbers = #tpu.dot_dimension_numbers<[1], [0], [0], [1], [0, 0, 1, 1], [], []>} : vector<64x16xbf16>, vector<16x256xbf16>, vector<64x256xf32> -> vector<64x256xf32>
    %c0_3 = arith.constant 0 : index
    %c0_4 = arith.constant 0 : index
    %3 = vector.load %arg3[%c0_3, %c0_4] : memref<64x1xf32, #tpu.memory_space<vmem>>, vector<64x1xf32>
    %4 = vector.broadcast %3 : vector<64x1xf32> to vector<64x256xf32>
    %5 = arith.addf %2, %4 : vector<64x256xf32>
    %cst_5 = arith.constant 0.000000e+00 : f32
    %6 = vector.broadcast %cst_5 : f32 to vector<64x256xf32>
    %7 = arith.maximumf %5, %6 : vector<64x256xf32>
    %8 = arith.truncf %7 : vector<64x256xf32> to vector<64x256xbf16>
    %c0_6 = arith.constant 0 : index
    %c0_7 = arith.constant 0 : index
    %9 = vector.load %arg4[%c0_6, %c0_7] : memref<1x64xbf16, #tpu.memory_space<vmem>>, vector<1x64xbf16>
    %cst_8 = arith.constant dense<0.000000e+00> : vector<1x256xf32>
    %10 = tpu.matmul %9, %8, %cst_8 {dimension_numbers = #tpu.dot_dimension_numbers<[1], [0], [0], [1], [0, 0, 1, 1], [], []>} : vector<1x64xbf16>, vector<64x256xbf16>, vector<1x256xf32> -> vector<1x256xf32>
    %c0_9 = arith.constant 0 : index
    %11 = memref.load %arg5[%c0_9] : memref<1xf32, #tpu.memory_space<smem>>
    %12 = vector.broadcast %11 : f32 to vector<1x256xf32>
    %13 = arith.addf %10, %12 : vector<1x256xf32>
    %c0_10 = arith.constant 0 : index
    %c0_11 = arith.constant 0 : index
    %14 = vector.load %arg6[%c0_10, %c0_11] : memref<1x256xf32, #tpu.memory_space<vmem>>, vector<1x256xf32>
    tpu.vector_store %arg6[%c0_10, %c0_11], %13 {strides = array<i32>} : memref<1x256xf32, #tpu.memory_space<vmem>>, vector<1x256xf32>,
    return
  }
  func.func @transform_0(%arg0: i32) -> (i32, i32) {
    %c0_i32 = arith.constant 0 : i32
    %c0_i32_0 = arith.constant 0 : i32
    return %c0_i32, %arg0 : i32, i32
  }
  func.func @transform_1(%arg0: i32) -> (i32, i32) {
    %c0_i32 = arith.constant 0 : i32
    %c0_i32_0 = arith.constant 0 : i32
    %c0_i32_1 = arith.constant 0 : i32
    return %c0_i32, %c0_i32_0 : i32, i32
  }
  func.func @transform_2(%arg0: i32) -> (i32, i32) {
    %c0_i32 = arith.constant 0 : i32
    %c0_i32_0 = arith.constant 0 : i32
    %c0_i32_1 = arith.constant 0 : i32
    return %c0_i32, %c0_i32_0 : i32, i32
  }
  func.func @transform_3(%arg0: i32) -> (i32, i32) {
    %c0_i32 = arith.constant 0 : i32
    %c0_i32_0 = arith.constant 0 : i32
    %c0_i32_1 = arith.constant 0 : i32
    return %c0_i32, %c0_i32_0 : i32, i32
  }
  func.func @transform_4(%arg0: i32) -> i32 {
    %c0_i32 = arith.constant 0 : i32
    %c0_i32_0 = arith.constant 0 : i32
    return %c0_i32 : i32
  }
  func.func @transform_5(%arg0: i32) -> (i32, i32) {
    %c0_i32 = arith.constant 0 : i32
    %c0_i32_0 = arith.constant 0 : i32
    return %c0_i32, %arg0 : i32, i32
  }
}

</mosaic_0001>

<bundles_post_ra>
// kernel: grid_manifold_forward.1
= control target key start
LH: loop header
LB: loop body
LE: loop exit
PB: predicated region body
PF: predicated region fallthrough
CT: control target
= control target key end

     0   :  { %v317_v1 = vmov 0   ;;  %vm110_vm0 = vcmask 130048   ;;  %vm223_vm1 = vcmask 523264   ;;  %s404_s0 = inlined_call_operand.vmem [shape: bf16[16,256], index: 0, kind: input, shape index: {}]   ;;  %s405_s1 = inlined_call_operand.vmem [shape: bf16[64,16], index: 1, kind: input, shape index: {}]   ;;  %s406_s2 = inlined_call_operand.vmem [shape: f32[64,1], index: 2, kind: input, shape index: {}]   ;;  %s407_s3 = inlined_call_operand.vmem [shape: bf16[1,64], index: 3, kind: input, shape index: {}]   ;;  %s408_s4 = inlined_call_operand.<no memory space> [shape: f32[1], index: 4, kind: input, shape index: {}]   ;;  %s409_s5 = inlined_call_operand.vmem [shape: f32[1,256], index: 5, kind: output, shape index: {}]  }
   0x1   :  { %v310_v0 = vld [vmem:[%s404_s0 + $0x4] ss:$8 sps:$4 sm:$0xff]   ;;  %155 = vmatprep.mubr.bf16.mxu0 %v317_v1  ;;  %308 = vset.pattern.permute.xlu0 %v317_v1  ;;  %v312_v2 = vld [vmem:[%s404_s0] ss:$8 sps:$4 sm:$0xff]   ;;  %v34_v5 = vld [vmem:[%s406_s2 + $0x10] sm:$0xff] }
   0x2   :  { %309 = vset.pattern.permute.xlu1 %v317_v1  ;;  %259 = vmatprep.mubr.bf16.mxu1 %v317_v1  ;;  %v313_v3 = vld [vmem:[%s405_s1] sm:$0xff]   ;;  %v33_v6 = vld [vmem:[%s406_s2 + $0x8] sm:$0xff]  ;;  %v35_v7 = vld [vmem:[%s406_s2 + $0x18] sm:$0xff] }
   0x3   :  { %123 = vmatprep.subr.bf16.mxu0 %v310_v0  ;;  %v32_v4 = vld [vmem:[%s406_s2] sm:$0xff]  ;;  %52 = vperm.xlu1 %309, %v34_v5   ;;  %v314_v8 = vld [vmem:[%s405_s1 + $0x8] sm:$0xff]   ;;  %v38_v11 = vld [vmem:[%s406_s2 + $0x30] sm:$0xff] }
   0x4   :  { %124 = vmatpush1.bf16.msra.mxu0 %v312_v2  ;;  %42 = vperm.xlu0 %308, %v32_v4   ;;  %v36_v9 = vld [vmem:[%s406_s2 + $0x20] sm:$0xff]  ;;  %v37_v10 = vld [vmem:[%s406_s2 + $0x28] sm:$0xff]  ;;  %v39_v12 = vld [vmem:[%s406_s2 + $0x38] sm:$0xff] }
   0x5   :  { %v315_v13 = vld [vmem:[%s405_s1 + $0x10] sm:$0xff]   ;;  %v316_v14 = vld [vmem:[%s405_s1 + $0x18] sm:$0xff]  }
   0x7   :  { %301 = vmatmul.mubr.msk.bf16.vlgmr.msra.gmra.mrb[0].mxu0 %vm110_vm0, %v313_v3  ;;  %57 = vperm.xlu1 %309, %v35_v7  }
   0x8   :  { %165 = vmatprep.mubr.bf16.mxu0 %v317_v1  ;;  %47 = vperm.xlu0 %308, %v33_v6  }
   0xb   :  { %67 = vperm.xlu1 %309, %v37_v10  }
   0xc   :  { %62 = vperm.xlu0 %308, %v36_v9  }
   0xf   :  { %302 = vmatmul.mubr.msk.bf16.gmra.mrb[4].mxu0 %vm110_vm0, %v314_v8  ;;  %77 = vperm.xlu1 %309, %v39_v12  }
  0x10   :  { %175 = vmatprep.mubr.bf16.mxu0 %v317_v1  ;;  %72 = vperm.xlu0 %308, %v38_v11  }
  0x17   :  { %303 = vmatmul.mubr.msk.bf16.gmra.mrb[8].mxu0 %vm110_vm0, %v315_v13 }
  0x18   :  { %185 = vmatprep.mubr.bf16.mxu0 %v317_v1 }
  0x1f   :  { %304 = vmatmul.mubr.msk.bf16.gmra.mrb[12].mxu0 %vm110_vm0, %v316_v14 }
  0x82   :  { %v53_v24 = vpop.permute.xlu1 %52 }
  0x83   :  { %v43_v15 = vpop.permute.xlu0 %42 }
  0x86   :  { %v58_v35 = vpop.permute.xlu1 %57 }
  0x87   :  { %v48_v17 = vpop.permute.xlu0 %47 }
  0x8a   :  { %v68_v51 = vpop.permute.xlu1 %67 }
  0x8b   :  { %v63_v46 = vpop.permute.xlu0 %62 }
  0x8e   :  { %v78_v3 = vpop.permute.xlu1 %77 }
  0x8f   :  { %v73_v62 = vpop.permute.xlu0 %72 }
  0xda   :  { %v157_v16 = vpop.f32.mrb[0].mxu0 }
  0xdb   :  { %v158_v18 = vadd.f32 %v157_v16, %v43_v15  ;;  %v159_v19 = vpop.f32.mrb[1].mxu0  ;;  %v318_v16 = vmov 1966171168  }
  0xdc   :  { %v160_v20 = vadd.f32 %v159_v19, %v43_v15  ;;  %v161_v21 = vpop.f32.mrb[2].mxu0  ;;  %v220_v15 = vld [vmem:[%s407_s3] sm:$0x1]  ;;  %v222_v19 = vstv %s408_s4 }
  0xdd   :  { %v162_v22 = vadd.f32 %v161_v21, %v48_v17  ;;  %v163_v23 = vpop.f32.mrb[3].mxu0  ;;  %v196_v26 = vmax.f32 %v158_v18, 0.0  ;;  %v274_v18 = vlaneseq }
  0xde   :  { %v164_v25 = vadd.f32 %v163_v23, %v48_v17  ;;  %v197_v28 = vmax.f32 %v160_v20, 0.0  ;;  %v272_v17 = vunpack.c.l.s4 %v318_v16 }
  0xdf   :  { %v198_v27 = vmax.f32 %v162_v22, 0.0  ;;  %v275_v21 = vshrl.u32 %v274_v18, 7  ;;  %vm288_vm2 = vcmp.lt.s32.totalorder %v274_v18, 256 }
  0xe0   :  { %v199_v29 = vmax.f32 %v164_v25, 0.0  ;;  %v273_v20 = vunpack.c.0.s8 %v272_v17 }
  0xe1   :  { %v212_v30 = vpack.c.bf16 %v198_v27, %v196_v26 }
  0xe2   :  { %v167_v31 = vpop.f32.mrb[4].mxu0  ;;  %v213_v32 = vpack.c.bf16 %v199_v29, %v197_v28  ;;  %v276_v26 = vsub.s32 %v273_v20, %v275_v21 }
  0xe3   :  { %v168_v33 = vadd.f32 %v167_v31, %v53_v24  ;;  %v169_v34 = vpop.f32.mrb[5].mxu0 }
  0xe4   :  { %v170_v36 = vadd.f32 %v169_v34, %v53_v24  ;;  %v171_v37 = vpop.f32.mrb[6].mxu0  ;;  %227 = vmatprep.subr.bf16.mxu1 %v213_v32 }
  0xe5   :  { %v172_v38 = vadd.f32 %v171_v37, %v58_v35  ;;  %v173_v39 = vpop.f32.mrb[7].mxu0  ;;  %228 = vmatpush1.bf16.msra.mxu1 %v212_v30  ;;  %v200_v41 = vmax.f32 %v168_v33, 0.0 }
  0xe6   :  { %v174_v40 = vadd.f32 %v173_v39, %v58_v35  ;;  %v201_v43 = vmax.f32 %v170_v36, 0.0 }
  0xe7   :  { %v202_v42 = vmax.f32 %v172_v38, 0.0 }
  0xe8   :  { %v203_v44 = vmax.f32 %v174_v40, 0.0 }
  0xe9   :  { %v214_v45 = vpack.c.bf16 %v202_v42, %v200_v41 }
  0xea   :  { %v215_v47 = vpack.c.bf16 %v203_v44, %v201_v43  ;;  %v177_v48 = vpop.f32.mrb[8].mxu0 }
  0xeb   :  { %v178_v49 = vadd.f32 %v177_v48, %v63_v46  ;;  %v179_v50 = vpop.f32.mrb[9].mxu0 }
  0xec   :  { %v180_v52 = vadd.f32 %v179_v50, %v63_v46  ;;  %v181_v53 = vpop.f32.mrb[10].mxu0  ;;  %229 = vmatprep.subr.bf16.mxu1 %v215_v47 }
  0xed   :  { %v182_v54 = vadd.f32 %v181_v53, %v68_v51  ;;  %v183_v55 = vpop.f32.mrb[11].mxu0  ;;  %230 = vmatpush1.bf16.msra.mxu1 %v214_v45  ;;  %v204_v57 = vmax.f32 %v178_v49, 0.0 }
  0xee   :  { %v184_v56 = vadd.f32 %v183_v55, %v68_v51  ;;  %v205_v59 = vmax.f32 %v180_v52, 0.0 }
  0xef   :  { %v206_v58 = vmax.f32 %v182_v54, 0.0 }
  0xf0   :  { %v207_v60 = vmax.f32 %v184_v56, 0.0 }
  0xf1   :  { %v216_v61 = vpack.c.bf16 %v206_v58, %v204_v57 }
  0xf2   :  { %v217_v63 = vpack.c.bf16 %v207_v60, %v205_v59  ;;  %v187_v0 = vpop.f32.mrb[12].mxu0 }
  0xf3   :  { %v188_v1 = vadd.f32 %v187_v0, %v73_v62  ;;  %v189_v2 = vpop.f32.mrb[13].mxu0 }
  0xf4   :  { %v190_v4 = vadd.f32 %v189_v2, %v73_v62  ;;  %v191_v5 = vpop.f32.mrb[14].mxu0  ;;  %231 = vmatprep.subr.bf16.mxu1 %v217_v63 }
  0xf5   :  { %v192_v6 = vadd.f32 %v191_v5, %v78_v3  ;;  %v193_v7 = vpop.f32.mrb[15].mxu0  ;;  %232 = vmatpush1.bf16.msra.mxu1 %v216_v61  ;;  %v208_v9 = vmax.f32 %v188_v1, 0.0 }
  0xf6   :  { %v194_v8 = vadd.f32 %v193_v7, %v78_v3  ;;  %v209_v11 = vmax.f32 %v190_v4, 0.0 }
  0xf7   :  { %v210_v10 = vmax.f32 %v192_v6, 0.0 }
  0xf8   :  { %v211_v12 = vmax.f32 %v194_v8, 0.0 }
  0xf9   :  { %v218_v13 = vpack.c.bf16 %v210_v10, %v208_v9 }
  0xfa   :  { %v219_v14 = vpack.c.bf16 %v211_v12, %v209_v11 }
  0xfc   :  { %233 = vmatprep.subr.bf16.mxu1 %v219_v14 }
  0xfd   :  { %234 = vmatpush1.bf16.msra.mxu1 %v218_v13 }
 0x100   :  { %305 = vmatmul.mubr.msk.bf16.vlgmr.msra.gmra.mrb[0].mxu1 %vm223_vm1, %v220_v15 }
 0x1d3   :  { %v261_v22 = vpop.f32.mrb[0].mxu1 }
 0x1d4   :  { %v262_v23 = vadd.f32 %v261_v22, %v222_v19  ;;  %v263_v24 = vpop.f32.mrb[1].mxu1 }
 0x1d5   :  { %v264_v25 = vadd.f32 %v263_v24, %v222_v19  ;;  %v265_v27 = vpop.f32.mrb[2].mxu1 }
 0x1d6   :  { %v266_v28 = vpop.f32.mrb[3].mxu1 }
 0x1d7   :  { %v270_v29 = vcombine.low %v262_v23, %v264_v25 }
 0x1d9   :  { %v277_v30 = vrot.slane %v270_v29, %v276_v26 }
 0x1db   :  { %v284_v31 = vrot.slane %v277_v30, %v276_v26 }
 0x1dd   :  { %290 = vst.msk [vmem:[%s409_s5] sm:$0x3] %vm288_vm2, %v284_v31 }

</bundles_post_ra>
